<compile_context>
chip_gen: v6e
topology: v6e:2x2x1
jax: 0.10.0
libtpu: 0.0.40
codegen_flags: <defaults>
</compile_context>

<pallas_src>
import jax
import jax.numpy as jnp
from jax.experimental import pallas as pl
from jax.experimental.pallas import tpu as pltpu


def _round_up(x, m):
    return (x + m - 1) // m * m


def imc_kernel(kin_ref, cmp_ref,
               w1k_ref, b1k_ref, w1c_ref, b1c_ref,
               w2_ref, b2_ref, w3_ref, b3_ref,
               out_ref):
    f32 = jnp.float32
    bf16 = jnp.bfloat16
    dh = w3_ref.shape[1] // 2  # per-tower hidden size of the last layer

    # ---- layer 1: one matmul per tower (K lane-padded, N = 128) ----
    hk = jnp.tanh(jnp.dot(kin_ref[...], w1k_ref[...], preferred_element_type=f32) + b1k_ref[...])
    hc = jnp.tanh(jnp.dot(cmp_ref[...], w1c_ref[...], preferred_element_type=f32) + b1c_ref[...])
    h1 = jnp.concatenate([hk, hc], axis=-1).astype(bf16)              # (T, 256) = [hk | hc]

    # ---- layers 2/3: both towers in a single block-diagonal MXU matmul each ----
    h2 = jnp.tanh(jnp.dot(h1, w2_ref[...], preferred_element_type=f32) + b2_ref[...]).astype(bf16)  # (T, 128)
    h3 = jnp.tanh(jnp.dot(h2, w3_ref[...], preferred_element_type=f32) + b3_ref[...])               # (T, 2*dh) f32

    # ---- row-wise inner product of the two tower halves, lane-dense store ----
    h3t = h3.T                                      # (2*dh, T) XLU transpose -> rows along lanes
    prod = h3t[:dh, :] * h3t[dh:, :]                # (dh, T), sublane-aligned slices
    score = jnp.sum(prod, axis=0, keepdims=True)    # (1, T)
    out_ref[...] = jax.nn.sigmoid(score)[None]      # (1, 1, T)


def imc_forward(kinase, compound, params, *, tile_b=1024):
    """kinase: (B, DK) f32, compound: (B, DC) f32.
    params = [wk1, bk1, wk2, bk2, wk3, bk3, wc1, bc1, wc2, bc2, wc3, bc3] with weights stored
    as [in_features, out_features]. Returns (B, 1) float32 sigmoid scores."""
    (wk1, bk1, wk2, bk2, wk3, bk3, wc1, bc1, wc2, bc2, wc3, bc3) = params
    B = kinase.shape[0]
    DK, H1 = wk1.shape
    DC = wc1.shape[0]
    H2 = wk2.shape[1]
    DH = wk3.shape[1]

    # Lane-friendly padded feature dims (zero weight rows keep results exact).
    DK_P = _round_up(DK, 128)   # 343 -> 384
    DC_P = _round_up(DC, 64)    # 166 -> 192 (block == full dim, so 64-alignment suffices)

    # Batch tile: multiple of 128 (needed for the lane-dense output / in-kernel transpose).
    tile_b = max(128, min(_round_up(tile_b, 128), _round_up(B, 128)))
    B_pad = _round_up(B, tile_b)
    num_tiles = B_pad // tile_b

    bf16, f32 = jnp.bfloat16, jnp.float32

    # ---- host-side prep: pad + bf16-cast activations, build fused block-diagonal weights ----
    # (In a real model the fused/padded weights would be precomputed once, not per call.)
    kin = jnp.zeros((B_pad, DK_P), bf16).at[:B, :DK].set(kinase.astype(bf16))
    cmp_ = jnp.zeros((B_pad, DC_P), bf16).at[:B, :DC].set(compound.astype(bf16))

    w1k = jnp.zeros((DK_P, H1), bf16).at[:DK].set(wk1.astype(bf16))
    w1c = jnp.zeros((DC_P, H1), bf16).at[:DC].set(wc1.astype(bf16))
    w2f = (jnp.zeros((2 * H1, 2 * H2), bf16)
           .at[:H1, :H2].set(wk2.astype(bf16))
           .at[H1:, H2:].set(wc2.astype(bf16)))
    w3f = (jnp.zeros((2 * H2, 2 * DH), bf16)
           .at[:H2, :DH].set(wk3.astype(bf16))
           .at[H2:, DH:].set(wc3.astype(bf16)))
    b1k = bk1.reshape(1, H1).astype(f32)
    b1c = bc1.reshape(1, H1).astype(f32)
    b2f = jnp.concatenate([bk2.reshape(1, H2), bc2.reshape(1, H2)], axis=1).astype(f32)
    b3f = jnp.concatenate([bk3.reshape(1, DH), bc3.reshape(1, DH)], axis=1).astype(f32)

    const = lambda i: (0, 0)  # weights/biases: fetched once, stay resident across batch tiles
    in_specs = [
        pl.BlockSpec((tile_b, DK_P), lambda i: (i, 0)),
        pl.BlockSpec((tile_b, DC_P), lambda i: (i, 0)),
        pl.BlockSpec((DK_P, H1), const),
        pl.BlockSpec((1, H1), const),
        pl.BlockSpec((DC_P, H1), const),
        pl.BlockSpec((1, H1), const),
        pl.BlockSpec((2 * H1, 2 * H2), const),
        pl.BlockSpec((1, 2 * H2), const),
        pl.BlockSpec((2 * H2, 2 * DH), const),
        pl.BlockSpec((1, 2 * DH), const),
    ]
    out_specs = pl.BlockSpec((1, 1, tile_b), lambda i: (i, 0, 0))
    out_shape = jax.ShapeDtypeStruct((num_tiles, 1, tile_b), f32)

    weight_bytes = int(2 * (w1k.size + w1c.size + w2f.size + w3f.size)
                       + 4 * (b1k.size + b1c.size + b2f.size + b3f.size))
    cost = pl.CostEstimate(
        flops=int(2 * B_pad * (DK_P * H1 + DC_P * H1 + 4 * H1 * H2 + 4 * H2 * DH)),
        transcendentals=int(B_pad * (2 * H1 + 2 * H2 + 2 * DH + 1)),
        bytes_accessed=int(2 * B_pad * (DK_P + DC_P) + 4 * B_pad + weight_bytes),
    )

    out = pl.pallas_call(
        imc_kernel,
        out_shape=out_shape,
        grid=(num_tiles,),
        in_specs=in_specs,
        out_specs=out_specs,
        compiler_params=pltpu.CompilerParams(dimension_semantics=("parallel",)),
        cost_estimate=cost,
    )(kin, cmp_, w1k, b1k, w1c, b1c, w2f, b2f, w3f, b3f)

    return out.reshape(B_pad)[:B].reshape(B, 1)


def xavier_normal(key, fan_in, fan_out, gain):
    std = gain * jnp.sqrt(2.0 / (fan_in + fan_out))
    return std * jax.random.normal(key, (fan_in, fan_out), dtype=jnp.float32)  # stored [in, out]


def make_params(key, dim_kinase=343, dim_compound=166, dim_hidden=64):
    gain = jnp.sqrt(2.0)  # calculate_gain('relu')
    dims = [(dim_kinase, 128), (128, 64), (64, dim_hidden),
            (dim_compound, 128), (128, 64), (64, dim_hidden)]
    params = []
    keys = jax.random.split(key, 2 * len(dims))
    for i, (fi, fo) in enumerate(dims):
        w = xavier_normal(keys[2 * i], fi, fo, gain)
        bound = 1.0 / jnp.sqrt(fi)  # nn.Linear-style bias init (exercises the bias path)
        b = jax.random.uniform(keys[2 * i + 1], (1, fo), jnp.float32, -bound, bound)
        params.append(w)
        params.append(b)
    return params


def imc_reference(kinase, compound, params):
    (wk1, bk1, wk2, bk2, wk3, bk3, wc1, bc1, wc2, bc2, wc3, bc3) = params
    hk = jnp.tanh(kinase @ wk1 + bk1)
    hk1 = jnp.tanh(hk @ wk2 + bk2)
    hk2 = jnp.tanh(hk1 @ wk3 + bk3)
    hc = jnp.tanh(compound @ wc1 + bc1)
    hc1 = jnp.tanh(hc @ wc2 + bc2)
    hc2 = jnp.tanh(hc1 @ wc3 + bc3)
    return jax.nn.sigmoid(jnp.sum(hk2 * hc2, axis=1, keepdims=True))


if __name__ == "__main__":
    key = jax.random.PRNGKey(0)
    k_in, k_cmp, k_par = jax.random.split(key, 3)

    B, DK, DC, DH = 8, 343, 166, 64
    kinase = jax.random.normal(k_in, (B, DK), dtype=jnp.float32)
    compound = jax.random.normal(k_cmp, (B, DC), dtype=jnp.float32)
    params = make_params(k_par, DK, DC, DH)

    out = imc_forward(kinase, compound, params)
    out = jax.block_until_ready(out)

    ref = imc_reference(kinase, compound, params)
    assert out.shape == (B, 1), out.shape
    # bf16 activation/weight streaming -> relaxed tolerance vs. the f32 reference
    assert jnp.allclose(out, ref, atol=3e-2), (out, ref)
    print("KERNEL_OK")
</pallas_src>

<mosaic_0001>
module attributes {stable_mosaic.version = 11 : i64} {
  func.func @imc_kernel(%arg0: i32, %arg1: memref<128x384xbf16, #tpu.memory_space<vmem>>, %arg2: memref<128x192xbf16, #tpu.memory_space<vmem>>, %arg3: memref<384x128xbf16, #tpu.memory_space<vmem>>, %arg4: memref<1x128xf32, #tpu.memory_space<vmem>>, %arg5: memref<192x128xbf16, #tpu.memory_space<vmem>>, %arg6: memref<1x128xf32, #tpu.memory_space<vmem>>, %arg7: memref<256x128xbf16, #tpu.memory_space<vmem>>, %arg8: memref<1x128xf32, #tpu.memory_space<vmem>>, %arg9: memref<128x128xbf16, #tpu.memory_space<vmem>>, %arg10: memref<1x128xf32, #tpu.memory_space<vmem>>, %arg11: memref<1x1x128xf32, #tpu.memory_space<vmem>>) attributes {dimension_semantics = [#tpu.dimension_semantics<parallel>], iteration_bounds = array<i64: 1>, scalar_prefetch = 0 : i64, scratch_operands = 0 : i64, tpu.core_type = #tpu.core_type<tc>, window_params = [{transform_indices = @transform_0, window_bounds = array<i64: 128, 384>}, {transform_indices = @transform_1, window_bounds = array<i64: 128, 192>}, {pipeline_mode = #tpu.pipeline_mode<synchronous>, transform_indices = @transform_2, window_bounds = array<i64: 384, 128>}, {pipeline_mode = #tpu.pipeline_mode<synchronous>, transform_indices = @transform_3, window_bounds = array<i64: 1, 128>}, {pipeline_mode = #tpu.pipeline_mode<synchronous>, transform_indices = @transform_4, window_bounds = array<i64: 192, 128>}, {pipeline_mode = #tpu.pipeline_mode<synchronous>, transform_indices = @transform_5, window_bounds = array<i64: 1, 128>}, {pipeline_mode = #tpu.pipeline_mode<synchronous>, transform_indices = @transform_6, window_bounds = array<i64: 256, 128>}, {pipeline_mode = #tpu.pipeline_mode<synchronous>, transform_indices = @transform_7, window_bounds = array<i64: 1, 128>}, {pipeline_mode = #tpu.pipeline_mode<synchronous>, transform_indices = @transform_8, window_bounds = array<i64: 128, 128>}, {pipeline_mode = #tpu.pipeline_mode<synchronous>, transform_indices = @transform_9, window_bounds = array<i64: 1, 128>}, {transform_indices = @transform_10, window_bounds = array<i64: 1, 1, 128>}]} {
    %c0 = arith.constant 0 : index
    %c0_0 = arith.constant 0 : index
    %0 = vector.load %arg1[%c0, %c0_0] : memref<128x384xbf16, #tpu.memory_space<vmem>>, vector<128x384xbf16>
    %c0_1 = arith.constant 0 : index
    %c0_2 = arith.constant 0 : index
    %1 = vector.load %arg3[%c0_1, %c0_2] : memref<384x128xbf16, #tpu.memory_space<vmem>>, vector<384x128xbf16>
    %cst = arith.constant dense<0.000000e+00> : vector<128x128xf32>
    %2 = tpu.matmul %0, %1, %cst {dimension_numbers = #tpu.dot_dimension_numbers<[1], [0], [0], [1], [0, 0, 1, 1], [], []>} : vector<128x384xbf16>, vector<384x128xbf16>, vector<128x128xf32> -> vector<128x128xf32>
    %c0_3 = arith.constant 0 : index
    %c0_4 = arith.constant 0 : index
    %3 = vector.load %arg4[%c0_3, %c0_4] : memref<1x128xf32, #tpu.memory_space<vmem>>, vector<1x128xf32>
    %4 = vector.broadcast %3 : vector<1x128xf32> to vector<128x128xf32>
    %5 = arith.addf %2, %4 : vector<128x128xf32>
    %6 = math.tanh %5 : vector<128x128xf32>
    %c0_5 = arith.constant 0 : index
    %c0_6 = arith.constant 0 : index
    %7 = vector.load %arg2[%c0_5, %c0_6] : memref<128x192xbf16, #tpu.memory_space<vmem>>, vector<128x192xbf16>
    %c0_7 = arith.constant 0 : index
    %c0_8 = arith.constant 0 : index
    %8 = vector.load %arg5[%c0_7, %c0_8] : memref<192x128xbf16, #tpu.memory_space<vmem>>, vector<192x128xbf16>
    %cst_9 = arith.constant dense<0.000000e+00> : vector<128x128xf32>
    %9 = tpu.matmul %7, %8, %cst_9 {dimension_numbers = #tpu.dot_dimension_numbers<[1], [0], [0], [1], [0, 0, 1, 1], [], []>} : vector<128x192xbf16>, vector<192x128xbf16>, vector<128x128xf32> -> vector<128x128xf32>
    %c0_10 = arith.constant 0 : index
    %c0_11 = arith.constant 0 : index
    %10 = vector.load %arg6[%c0_10, %c0_11] : memref<1x128xf32, #tpu.memory_space<vmem>>, vector<1x128xf32>
    %11 = vector.broadcast %10 : vector<1x128xf32> to vector<128x128xf32>
    %12 = arith.addf %9, %11 : vector<128x128xf32>
    %13 = math.tanh %12 : vector<128x128xf32>
    %14 = tpu.concatenate %6, %13 in 1 : vector<128x128xf32>, vector<128x128xf32> -> vector<128x256xf32>
    %15 = arith.truncf %14 : vector<128x256xf32> to vector<128x256xbf16>
    %c0_12 = arith.constant 0 : index
    %c0_13 = arith.constant 0 : index
    %16 = vector.load %arg7[%c0_12, %c0_13] : memref<256x128xbf16, #tpu.memory_space<vmem>>, vector<256x128xbf16>
    %cst_14 = arith.constant dense<0.000000e+00> : vector<128x128xf32>
    %17 = tpu.matmul %15, %16, %cst_14 {dimension_numbers = #tpu.dot_dimension_numbers<[1], [0], [0], [1], [0, 0, 1, 1], [], []>} : vector<128x256xbf16>, vector<256x128xbf16>, vector<128x128xf32> -> vector<128x128xf32>
    %c0_15 = arith.constant 0 : index
    %c0_16 = arith.constant 0 : index
    %18 = vector.load %arg8[%c0_15, %c0_16] : memref<1x128xf32, #tpu.memory_space<vmem>>, vector<1x128xf32>
    %19 = vector.broadcast %18 : vector<1x128xf32> to vector<128x128xf32>
    %20 = arith.addf %17, %19 : vector<128x128xf32>
    %21 = math.tanh %20 : vector<128x128xf32>
    %22 = arith.truncf %21 : vector<128x128xf32> to vector<128x128xbf16>
    %c0_17 = arith.constant 0 : index
    %c0_18 = arith.constant 0 : index
    %23 = vector.load %arg9[%c0_17, %c0_18] : memref<128x128xbf16, #tpu.memory_space<vmem>>, vector<128x128xbf16>
    %cst_19 = arith.constant dense<0.000000e+00> : vector<128x128xf32>
    %24 = tpu.matmul %22, %23, %cst_19 {dimension_numbers = #tpu.dot_dimension_numbers<[1], [0], [0], [1], [0, 0, 1, 1], [], []>} : vector<128x128xbf16>, vector<128x128xbf16>, vector<128x128xf32> -> vector<128x128xf32>
    %c0_20 = arith.constant 0 : index
    %c0_21 = arith.constant 0 : index
    %25 = vector.load %arg10[%c0_20, %c0_21] : memref<1x128xf32, #tpu.memory_space<vmem>>, vector<1x128xf32>
    %26 = vector.broadcast %25 : vector<1x128xf32> to vector<128x128xf32>
    %27 = arith.addf %24, %26 : vector<128x128xf32>
    %28 = math.tanh %27 : vector<128x128xf32>
    %29 = tpu.transpose %28, [1, 0] : vector<128x128xf32> -> vector<128x128xf32>
    %30 = vector.extract_strided_slice %29 {offsets = [0, 0], sizes = [64, 128], strides = [1, 1]} : vector<128x128xf32> to vector<64x128xf32>
    %31 = vector.extract_strided_slice %29 {offsets = [64, 0], sizes = [64, 128], strides = [1, 1]} : vector<128x128xf32> to vector<64x128xf32>
    %32 = arith.mulf %30, %31 : vector<64x128xf32>
    %cst_22 = arith.constant dense<0.000000e+00> : vector<128xf32>
    %33 = vector.multi_reduction <add>, %32, %cst_22 [0] : vector<64x128xf32> to vector<128xf32>
    %34 = vector.shape_cast %33 : vector<128xf32> to vector<1x128xf32>
    %35 = arith.negf %34 : vector<1x128xf32>
    %36 = math.exp %35 : vector<1x128xf32>
    %cst_23 = arith.constant 1.000000e+00 : f32
    %37 = vector.broadcast %cst_23 : f32 to vector<1x128xf32>
    %38 = arith.addf %37, %36 : vector<1x128xf32>
    %39 = arith.divf %37, %38 : vector<1x128xf32>
    %40 = vector.shape_cast %39 : vector<1x128xf32> to vector<1x1x128xf32>
    %c0_24 = arith.constant 0 : index
    %c0_25 = arith.constant 0 : index
    %c0_26 = arith.constant 0 : index
    %41 = vector.load %arg11[%c0_24, %c0_25, %c0_26] : memref<1x1x128xf32, #tpu.memory_space<vmem>>, vector<1x1x128xf32>
    tpu.vector_store %arg11[%c0_24, %c0_25, %c0_26], %40 {strides = array<i32>} : memref<1x1x128xf32, #tpu.memory_space<vmem>>, vector<1x1x128xf32>,
    return
  }
  func.func @transform_0(%arg0: i32) -> (i32, i32) {
    %c0_i32 = arith.constant 0 : i32
    %c0_i32_0 = arith.constant 0 : i32
    return %arg0, %c0_i32 : i32, i32
  }
  func.func @transform_1(%arg0: i32) -> (i32, i32) {
    %c0_i32 = arith.constant 0 : i32
    %c0_i32_0 = arith.constant 0 : i32
    return %arg0, %c0_i32 : i32, i32
  }
  func.func @transform_2(%arg0: i32) -> (i32, i32) {
    %c0_i32 = arith.constant 0 : i32
    %c0_i32_0 = arith.constant 0 : i32
    %c0_i32_1 = arith.constant 0 : i32
    return %c0_i32, %c0_i32_0 : i32, i32
  }
  func.func @transform_3(%arg0: i32) -> (i32, i32) {
    %c0_i32 = arith.constant 0 : i32
    %c0_i32_0 = arith.constant 0 : i32
    %c0_i32_1 = arith.constant 0 : i32
    return %c0_i32, %c0_i32_0 : i32, i32
  }
  func.func @transform_4(%arg0: i32) -> (i32, i32) {
    %c0_i32 = arith.constant 0 : i32
    %c0_i32_0 = arith.constant 0 : i32
    %c0_i32_1 = arith.constant 0 : i32
    return %c0_i32, %c0_i32_0 : i32, i32
  }
  func.func @transform_5(%arg0: i32) -> (i32, i32) {
    %c0_i32 = arith.constant 0 : i32
    %c0_i32_0 = arith.constant 0 : i32
    %c0_i32_1 = arith.constant 0 : i32
    return %c0_i32, %c0_i32_0 : i32, i32
  }
  func.func @transform_6(%arg0: i32) -> (i32, i32) {
    %c0_i32 = arith.constant 0 : i32
    %c0_i32_0 = arith.constant 0 : i32
    %c0_i32_1 = arith.constant 0 : i32
    return %c0_i32, %c0_i32_0 : i32, i32
  }
  func.func @transform_7(%arg0: i32) -> (i32, i32) {
    %c0_i32 = arith.constant 0 : i32
    %c0_i32_0 = arith.constant 0 : i32
    %c0_i32_1 = arith.constant 0 : i32
    return %c0_i32, %c0_i32_0 : i32, i32
  }
  func.func @transform_8(%arg0: i32) -> (i32, i32) {
    %c0_i32 = arith.constant 0 : i32
    %c0_i32_0 = arith.constant 0 : i32
    %c0_i32_1 = arith.constant 0 : i32
    return %c0_i32, %c0_i32_0 : i32, i32
  }
  func.func @transform_9(%arg0: i32) -> (i32, i32) {
    %c0_i32 = arith.constant 0 : i32
    %c0_i32_0 = arith.constant 0 : i32
    %c0_i32_1 = arith.constant 0 : i32
    return %c0_i32, %c0_i32_0 : i32, i32
  }
  func.func @transform_10(%arg0: i32) -> (i32, i32, i32) {
    %c0_i32 = arith.constant 0 : i32
    %c0_i32_0 = arith.constant 0 : i32
    %c0_i32_1 = arith.constant 0 : i32
    return %arg0, %c0_i32, %c0_i32_0 : i32, i32, i32
  }
}

</mosaic_0001>

<bundles_post_ra>
// kernel: tpu_custom_call.1
= control target key start
LH: loop header
LB: loop body
LE: loop exit
PB: predicated region body
PF: predicated region fallthrough
CT: control target
= control target key end

     0   :  { %15 = vsyncpa [#allocation3], 0  ;;  %s2674_s0 = inlined_call_operand.vmem [shape: bf16[128,384], index: 0, kind: input, shape index: {}]   ;;  %s2675_s1 = inlined_call_operand.vmem [shape: bf16[128,192], index: 1, kind: input, shape index: {}]   ;;  %s2676_s2 = inlined_call_operand.hbm [shape: bf16[384,128], index: 2, kind: input, shape index: {}]   ;;  %s2677_s3 = inlined_call_operand.vmem [shape: f32[1,128], index: 3, kind: input, shape index: {}]   ;;  %s2678_s4 = inlined_call_operand.hbm [shape: bf16[192,128], index: 4, kind: input, shape index: {}]   ;;  %s2679_s5 = inlined_call_operand.vmem [shape: f32[1,128], index: 5, kind: input, shape index: {}]   ;;  %s2680_s6 = inlined_call_operand.hbm [shape: bf16[256,128], index: 6, kind: input, shape index: {}]   ;;  %s2681_s7 = inlined_call_operand.vmem [shape: f32[1,128], index: 7, kind: input, shape index: {}]   ;;  %s2682_s8 = inlined_call_operand.hbm [shape: bf16[128,128], index: 8, kind: input, shape index: {}]   ;;  %s2683_s9 = inlined_call_operand.vmem [shape: f32[1,128], index: 9, kind: input, shape index: {}]   ;;  %s2684_s10 = inlined_call_operand.hbm [shape: f32[1,1,128], index: 10, kind: output, shape index: {}]  }
   0x1   :  { %16 = vsyncpa [#allocation6], 0 }
   0x2   :  { %17 = vsyncpa [#allocation9], 0 }
   0x3   :  { %18 = vsyncpa [#allocation4], 0  ;;  %s2240_s13 = smov [#allocation5]   ;;  %s2241_s15 = smov [#allocation2]  }
   0x4   :  { %s42_s14 = sshll.u32 %s2240_s13, 4  ;;  %s28_s16 = sshll.u32 %s2241_s15, 4  ;;  %s43_s14 = int_to_ptr.vmem [resolvable:$true] %s42_s14  ;;  %s29_s16 = int_to_ptr.vmem [resolvable:$true] %s28_s16 }
   0x5   :  { %s2140_s17 = scalar_lea.vmem %s43_s14, 1536  ;;  %p2145_p1 = scmp.lt.s32.totalorder %s43_s14, %s43_s14 }
   0x6   :  { %p2141_p0 = scmp.ne.s32.totalorder %s43_s14, %s2140_s17  ;;  %p2146_p2 = scmp.lt.s32.totalorder %s2140_s17, %s2140_s17 }
   0x8   :  { %p2147_p3 = por %p2146_p2, %p2145_p1 }
   0xa   :  { %p2148_p4 = pnand %p2147_p3, %p2141_p0 }
   0xc   :  { %2151 = shalt.err (!%p2148_p4)
}
   0xd   :  { %s2242_s18 = smov 64   ;;  %s2243_s19 = smov 4  }
   0xe   :  { %48 = dma.hbm_to_vmem [thread:$0]  %s2678_s4, 1536, %s43_s14, [#allocation6], %s2242_s18, %s2242_s18, %s2243_s19  }
   0xf   :  { %s2160_s22 = scalar_lea.vmem %s29_s16, 3072  ;;  %p2165_p6 = scmp.lt.s32.totalorder %s29_s16, %s29_s16 }
  0x10   :  { %p2161_p5 = scmp.ne.s32.totalorder %s29_s16, %s2160_s22  ;;  %p2166_p7 = scmp.lt.s32.totalorder %s2160_s22, %s2160_s22 }
  0x12   :  { %p2167_p8 = por %p2166_p7, %p2165_p6 }
  0x14   :  { %p2168_p9 = pnand %p2167_p8, %p2161_p5 }
  0x16   :  { %2171 = shalt.err (!%p2168_p9)
}
  0x17   :  { %34 = dma.hbm_to_vmem [thread:$0]  %s2676_s2, 3072, %s29_s16, [#allocation3], %s2242_s18, %s2242_s18, %s2243_s19  }
  0x18   :  { %s2244_s25 = smov [#allocation7]   ;;  %s2245_s27 = smov [#allocation8]  }
  0x19   :  { %s56_s26 = sshll.u32 %s2244_s25, 4  ;;  %s70_s28 = sshll.u32 %s2245_s27, 4  ;;  %s57_s26 = int_to_ptr.vmem [resolvable:$true] %s56_s26  ;;  %s71_s28 = int_to_ptr.vmem [resolvable:$true] %s70_s28 }
  0x1a   :  { %s2180_s4 = scalar_lea.vmem %s57_s26, 2048  ;;  %p2185_p11 = scmp.lt.s32.totalorder %s57_s26, %s57_s26 }
  0x1b   :  { %p2181_p10 = scmp.ne.s32.totalorder %s57_s26, %s2180_s4  ;;  %p2186_p12 = scmp.lt.s32.totalorder %s2180_s4, %s2180_s4 }
  0x1d   :  { %p2187_p13 = por %p2186_p12, %p2185_p11 }
  0x1f   :  { %p2188_p0 = pnand %p2187_p13, %p2181_p10 }
  0x21   :  { %2191 = shalt.err (!%p2188_p0)
}
  0x22   :  { %62 = dma.hbm_to_vmem [thread:$0]  %s2680_s6, 2048, %s57_s26, [#allocation6], %s2242_s18, %s2242_s18, %s2243_s19  }
  0x23   :  { %s2200_s2 = scalar_lea.vmem %s71_s28, 1024  ;;  %p2205_p2 = scmp.lt.s32.totalorder %s71_s28, %s71_s28 }
  0x24   :  { %p2201_p1 = scmp.ne.s32.totalorder %s71_s28, %s2200_s2  ;;  %p2206_p3 = scmp.lt.s32.totalorder %s2200_s2, %s2200_s2 }
  0x26   :  { %p2207_p4 = por %p2206_p3, %p2205_p2 }
  0x28   :  { %p2208_p5 = pnand %p2207_p4, %p2201_p1 }
  0x2a   :  { %2211 = shalt.err (!%p2208_p5)
}
  0x2b   :  { %76 = dma.hbm_to_vmem [thread:$0]  %s2682_s8, 1024, %s71_s28, [#allocation9], %s2242_s18, %s2242_s18, %s2243_s19  }
  0x2c   :  { %2232 = dma.done.wait [#allocation3], 3072  }
  0x2d   :  { %2233 = vsyncadd [#allocation3], 4294964224 }
  0x2e   :  { %2234 = dma.done.wait [#allocation6], 3584  }
  0x2f   :  { %2235 = vsyncadd [#allocation6], 4294963712 }
  0x30   :  { %2236 = dma.done.wait [#allocation9], 1024  }
  0x31   :  { %2237 = vsyncadd [#allocation9], 4294966272  ;;  %v1884_v0 = vld [vmem:[#allocation2 + $0x78] sm:$0xff]   ;;  %v1887_v3 = vld [vmem:[#allocation2 + $0x70] sm:$0xff]   ;;  %v2246_v30 = vmov 0   ;;  %vm852_vm0 = vcmask 523264  }
  0x32   :  { %v1885_v1 = vld [vmem:[#allocation2 + $0xb8] sm:$0xff]   ;;  %1636 = vmatprep.subr.bf16.mxu0 %v1884_v0  ;;  %v1888_v4 = vld [vmem:[#allocation2 + $0xb0] sm:$0xff]   ;;  %v1890_v6 = vld [vmem:[#allocation2 + $0x68] sm:$0xff]  }
  0x33   :  { %v1886_v2 = vld [vmem:[#allocation2 + $0x38] sm:$0xff]   ;;  %1796 = vmatprep.subr.bf16.mxu1 %v1885_v1  ;;  %v1889_v5 = vld [vmem:[#allocation2 + $0x30] sm:$0xff]   ;;  %v1891_v7 = vld [vmem:[#allocation2 + $0xa8] sm:$0xff]  }
  0x34   :  { %1637 = vmatpush3.bf16.msra.mxu0 %v1886_v2  ;;  %1797 = vmatpush3.bf16.msra.mxu1 %v1885_v1  ;;  %v1892_v8 = vld [vmem:[#allocation2 + $0x28] sm:$0xff]   ;;  %v1893_v9 = vld [vmem:[#allocation2 + $0x60] sm:$0xff]   ;;  %v1896_v12 = vld [vmem:[#allocation2 + $0x58] sm:$0xff]  }
  0x35   :  { %1638 = vmatprep.subr.bf16.mxu0 %v1887_v3  ;;  %1798 = vmatprep.subr.bf16.mxu1 %v1888_v4  ;;  %v1894_v10 = vld [vmem:[#allocation2 + $0xa0] sm:$0xff]   ;;  %v1897_v13 = vld [vmem:[#allocation2 + $0x98] sm:$0xff]   ;;  %v1899_v15 = vld [vmem:[#allocation2 + $0x50] sm:$0xff]  }
  0x36   :  { %v1895_v11 = vld [vmem:[#allocation2 + $0x20] sm:$0xff]   ;;  %v1898_v14 = vld [vmem:[#allocation2 + $0x18] sm:$0xff]   ;;  %v1900_v16 = vld [vmem:[#allocation2 + $0x90] sm:$0xff]  }
  0x37   :  { %v1901_v17 = vld [vmem:[#allocation2 + $0x10] sm:$0xff]   ;;  %v1902_v18 = vld [vmem:[#allocation2 + $0x48] sm:$0xff]   ;;  %v1905_v21 = vld [vmem:[#allocation2 + $0x40] sm:$0xff]  }
  0x38   :  { %1639 = vmatpush3.bf16.msra.mxu0 %v1889_v5  ;;  %1799 = vmatpush3.bf16.msra.mxu1 %v1888_v4  ;;  %v1903_v19 = vld [vmem:[#allocation2 + $0x88] sm:$0xff]   ;;  %v1906_v22 = vld [vmem:[#allocation2 + $0x80] sm:$0xff]   ;;  %v1913_v28 = vld [vmem:[#allocation5 + $0x38] sm:$0xff]  }
  0x39   :  { %1640 = vmatprep.subr.bf16.mxu0 %v1890_v6  ;;  %1800 = vmatprep.subr.bf16.mxu1 %v1891_v7  ;;  %v1904_v20 = vld [vmem:[#allocation2 + $0x8] sm:$0xff]   ;;  %v1910_v23 = vld [vmem:[%s2674_s0 + $0x4] ss:$12 sps:$4 sm:$0xff]   ;;  %v1920_v36 = vld [vmem:[%s2674_s0 + $0x34] ss:$12 sps:$4 sm:$0xff]  }
  0x3a   :  { %v1911_v24 = vld [vmem:[%s2674_s0 + $0x8] ss:$12 sps:$4 sm:$0xff]   ;;  %483 = vmatprep.mubr.bf16.mxu0 %v1910_v23  ;;  %v1907_v25 = vld [vmem:[#allocation2] sm:$0xff]   ;;  %v1925_v35 = vld [vmem:[%s2674_s0 + $0x50] ss:$12 sps:$4 sm:$0xff]  }
  0x3b   :  { %v1908_v26 = vld [vmem:[%s2674_s0] ss:$12 sps:$4 sm:$0xff]   ;;  %1812 = vmatprep.mubr.bf16.mxu1 %v1911_v24  ;;  %v1915_v29 = vld [vmem:[%s2674_s0 + $0x1c] ss:$12 sps:$4 sm:$0xff]   ;;  %v1923_v31 = vld [vmem:[%s2674_s0 + $0x38] ss:$12 sps:$4 sm:$0xff]  }
  0x3c   :  { %1641 = vmatpush3.bf16.msra.mxu0 %v1892_v8  ;;  %1801 = vmatpush3.bf16.msra.mxu1 %v1891_v7  ;;  %v1912_v27 = vld [vmem:[%s2674_s0 + $0x20] ss:$12 sps:$4 sm:$0xff]   ;;  %v1914_v32 = vld [vmem:[#allocation5 + $0x30] sm:$0xff]   ;;  %v1917_v33 = vld [vmem:[%s2674_s0 + $0x18] ss:$12 sps:$4 sm:$0xff]  }
  0x3d   :  { %1642 = vmatprep.subr.bf16.mxu0 %v1893_v9  ;;  %1802 = vmatprep.subr.bf16.mxu1 %v1894_v10  ;;  %v1918_v34 = vld [vmem:[#allocation5 + $0x28] sm:$0xff]   ;;  %v1919_v38 = vld [vmem:[#allocation5 + $0x20] sm:$0xff]   ;;  %v1922_v39 = vld [vmem:[%s2674_s0 + $0x30] ss:$12 sps:$4 sm:$0xff]  }
  0x3e   :  { %v1930_v37 = vld [vmem:[%s2674_s0 + $0x68] ss:$12 sps:$4 sm:$0xff]   ;;  %v1924_v40 = vld [vmem:[#allocation5 + $0x18] sm:$0xff]   ;;  %v1932_v41 = vld [vmem:[%s2674_s0 + $0x80] ss:$12 sps:$4 sm:$0xff]  }
  0x3f   :  { %v1927_v42 = vld [vmem:[%s2674_s0 + $0x4c] ss:$12 sps:$4 sm:$0xff]   ;;  %v1926_v44 = vld [vmem:[#allocation5 + $0x10] sm:$0xff]   ;;  %v1933_v50 = vld [vmem:[#allocation5] sm:$0xff]  }
  0x40   :  { %1643 = vmatpush3.bf16.msra.mxu0 %v1895_v11  ;;  %1803 = vmatpush3.bf16.msra.mxu1 %v1894_v10  ;;  %v1937_v43 = vld [vmem:[%s2674_s0 + $0x98] ss:$12 sps:$4 sm:$0xff]   ;;  %v1929_v45 = vld [vmem:[%s2674_s0 + $0x48] ss:$12 sps:$4 sm:$0xff]   ;;  %v1939_v46 = vld [vmem:[%s2674_s0 + $0xb0] ss:$12 sps:$4 sm:$0xff]  }
  0x41   :  { %1644 = vmatprep.subr.bf16.mxu0 %v1896_v12  ;;  %1804 = vmatprep.subr.bf16.mxu1 %v1897_v13  ;;  %v1931_v47 = vld [vmem:[#allocation5 + $0x8] sm:$0xff]   ;;  %v1934_v48 = vld [vmem:[%s2674_s0 + $0x64] ss:$12 sps:$4 sm:$0xff]   ;;  %v1938_v52 = vld [vmem:[#allocation5 + $0x58] sm:$0xff]  }
  0x42   :  { %v1950_v49 = vld [vmem:[%s2675_s1 + $0x4] ss:$8 sps:$4 sm:$0xff]   ;;  %v1941_v53 = vld [vmem:[%s2674_s0 + $0x7c] ss:$12 sps:$4 sm:$0xff]   ;;  %v1940_v54 = vld [vmem:[#allocation5 + $0x50] sm:$0xff]  }
  0x43   :  { %v1936_v51 = vld [vmem:[%s2674_s0 + $0x60] ss:$12 sps:$4 sm:$0xff]   ;;  %v1943_v55 = vld [vmem:[%s2674_s0 + $0x78] ss:$12 sps:$4 sm:$0xff]   ;;  %v1951_v60 = vld [vmem:[%s2674_s0 + $0x90] ss:$12 sps:$4 sm:$0xff]  }
  0x44   :  { %1645 = vmatpush3.bf16.msra.mxu0 %v1898_v14  ;;  %1805 = vmatpush3.bf16.msra.mxu1 %v1897_v13  ;;  %v1944_v56 = vld [vmem:[#allocation5 + $0x48] sm:$0xff]   ;;  %v1946_v57 = vld [vmem:[%s2674_s0 + $0x94] ss:$12 sps:$4 sm:$0xff]   ;;  %v1957_v0 = vld [vmem:[%s2675_s1 + $0x10] ss:$8 sps:$4 sm:$0xff]  }
  0x45   :  { %1646 = vmatprep.subr.bf16.mxu0 %v1899_v15  ;;  %1806 = vmatprep.subr.bf16.mxu1 %v1900_v16  ;;  %v1945_v58 = vld [vmem:[#allocation5 + $0x40] sm:$0xff]   ;;  %v1952_v61 = vld [vmem:[%s2674_s0 + $0xac] ss:$12 sps:$4 sm:$0xff]   ;;  %v1954_v62 = vld [vmem:[%s2675_s1 + $0x14] ss:$8 sps:$4 sm:$0xff]  }
  0x46   :  { %v1948_v59 = vld [vmem:[%s2675_s1] ss:$8 sps:$4 sm:$0xff]   ;;  %v1958_v1 = vld [vmem:[%s2675_s1 + $0x24] ss:$8 sps:$4 sm:$0xff]   ;;  %v1961_v3 = vld [vmem:[%s2675_s1 + $0x34] ss:$8 sps:$4 sm:$0xff]  }
  0x47   :  { %v1956_v63 = vld [vmem:[%s2674_s0 + $0xa8] ss:$12 sps:$4 sm:$0xff]   ;;  %v1963_v4 = vld [vmem:[%s2675_s1 + $0x30] ss:$8 sps:$4 sm:$0xff]   ;;  %v1964_v5 = vld [vmem:[%s2675_s1 + $0x44] ss:$8 sps:$4 sm:$0xff]  }
  0x48   :  { %1647 = vmatpush3.bf16.msra.mxu0 %v1901_v17  ;;  %1807 = vmatpush3.bf16.msra.mxu1 %v1900_v16  ;;  %v1960_v2 = vld [vmem:[%s2675_s1 + $0x20] ss:$8 sps:$4 sm:$0xff]   ;;  %v1967_v7 = vld [vmem:[%s2675_s1 + $0x54] ss:$8 sps:$4 sm:$0xff]   ;;  %v1969_v10 = vld [vmem:[%s2675_s1 + $0x50] ss:$8 sps:$4 sm:$0xff]  }
  0x49   :  { %1648 = vmatprep.subr.bf16.mxu0 %v1902_v18  ;;  %1808 = vmatprep.subr.bf16.mxu1 %v1903_v19  ;;  %v1966_v6 = vld [vmem:[%s2675_s1 + $0x40] ss:$8 sps:$4 sm:$0xff]   ;;  %v1976_v8 = vld [vmem:[#allocation7 + $0x78] sm:$0xff]   ;;  %v1970_v11 = vld [vmem:[%s2675_s1 + $0x64] ss:$8 sps:$4 sm:$0xff]  }
  0x4a   :  { %v1977_v9 = vld [vmem:[#allocation7 + $0x38] sm:$0xff]   ;;  %v1978_v12 = vld [vmem:[#allocation7 + $0x70] sm:$0xff]   ;;  %v1980_v14 = vld [vmem:[#allocation7 + $0x68] sm:$0xff]  }
  0x4b   :  { %v1979_v13 = vld [vmem:[#allocation7 + $0x30] sm:$0xff]   ;;  %v1972_v15 = vld [vmem:[%s2675_s1 + $0x60] ss:$8 sps:$4 sm:$0xff]  }
  0x4c   :  { %1649 = vmatpush3.bf16.msra.mxu0 %v1904_v20  ;;  %1809 = vmatpush3.bf16.msra.mxu1 %v1903_v19  ;;  %v1973_v16 = vld [vmem:[%s2675_s1 + $0x74] ss:$8 sps:$4 sm:$0xff]   ;;  %v1981_v17 = vld [vmem:[#allocation7 + $0x28] sm:$0xff]   ;;  %v1975_v18 = vld [vmem:[%s2675_s1 + $0x70] ss:$8 sps:$4 sm:$0xff]  }
  0x4d   :  { %1650 = vmatprep.subr.bf16.mxu0 %v1905_v21  ;;  %1810 = vmatprep.subr.bf16.mxu1 %v1906_v22  ;;  %v1982_v19 = vld [vmem:[#allocation7 + $0x60] sm:$0xff]   ;;  %v1984_v21 = vld [vmem:[#allocation7 + $0x58] sm:$0xff]   ;;  %v1986_v23 = vld [vmem:[#allocation7 + $0x50] sm:$0xff]  }
  0x4e   :  { %v1983_v20 = vld [vmem:[#allocation7 + $0x20] sm:$0xff]   ;;  %v1987_v24 = vld [vmem:[#allocation7 + $0x10] sm:$0xff]  }
  0x50   :  { %1651 = vmatpush3.bf16.msra.mxu0 %v1907_v25  ;;  %1811 = vmatpush3.bf16.msra.mxu1 %v1906_v22  ;;  %v1985_v22 = vld [vmem:[#allocation7 + $0x18] sm:$0xff]   ;;  %v1988_v25 = vld [vmem:[#allocation7 + $0x48] sm:$0xff]  }
  0x51   :  { %877 = vmatprep.subr.bf16.mxu1 %v2246_v30  ;;  %1716 = vmatprep.subr.bf16.mxu0 %v1976_v8  ;;  %v2531_v8 = vld [vmem:[%s2677_s3] ss:$0 sm:$0xff] }
  0x53   :  { %484 = vmatmul.mubr.bf16.vlgmr.msra.gmra.mxu0 %v1908_v26  ;;  %1813 = vmatmul.mubr.bf16.vlgmr.msra.gmra.mxu1 %v1912_v27  ;;  %v1989_v26 = vld [vmem:[#allocation7 + $0x8] sm:$0xff]   ;;  %v1990_v27 = vld [vmem:[#allocation7 + $0x40] sm:$0xff]  }
  0x54   :  { %878 = vmatpush1.bf16.msra.mxu1 %v1913_v28  ;;  %491 = vmatprep.mubr.bf16.mxu0 %v1915_v29  ;;  %v1991_v28 = vld [vmem:[#allocation7] sm:$0xff]  }
  0x55   :  { %879 = vmatprep.subr.bf16.mxu1 %v2246_v30  ;;  %1816 = vmatprep.mubr.bf16.mxu1 %v1923_v31  ;;  %v2469_v31 = vld [vmem:[#allocation8 + $0x38] sm:$0xff]  }
  0x56   :  { %1717 = vmatpush3.bf16.msra.mxu0 %v1977_v9 }
  0x57   :  { %1718 = vmatprep.subr.bf16.mxu0 %v1978_v12 }
  0x58   :  { %880 = vmatpush1.bf16.msra.mxu1 %v1914_v32 }
  0x59   :  { %881 = vmatprep.subr.bf16.mxu1 %v2246_v30 }
  0x5a   :  { %1719 = vmatpush3.bf16.msra.mxu0 %v1979_v13  ;;  %v2543_v13 = vld [vmem:[%s2679_s5] ss:$0 sm:$0xff] }
  0x5b   :  { %492 = vmatmul.mubr.bf16.gmra.mxu0 %v1917_v33  ;;  %1817 = vmatmul.mubr.bf16.gmra.mxu1 %v1925_v35 }
  0x5c   :  { %882 = vmatpush1.bf16.msra.mxu1 %v1918_v34  ;;  %499 = vmatprep.mubr.bf16.mxu0 %v1920_v36  ;;  %v2472_v34 = vld [vmem:[#allocation8 + $0x30] sm:$0xff]  }
  0x5d   :  { %883 = vmatprep.subr.bf16.mxu1 %v2246_v30  ;;  %1820 = vmatprep.mubr.bf16.mxu1 %v1930_v37 }
  0x5e   :  { %1720 = vmatprep.subr.bf16.mxu0 %v1980_v14 }
  0x5f   :  { %1721 = vmatpush3.bf16.msra.mxu0 %v1981_v17 }
  0x60   :  { %884 = vmatpush1.bf16.msra.mxu1 %v1919_v38  ;;  %1722 = vmatprep.subr.bf16.mxu0 %v1982_v19 }
  0x61   :  { %885 = vmatprep.subr.bf16.mxu1 %v2246_v30 }
  0x63   :  { %500 = vmatmul.mubr.bf16.gmra.mxu0 %v1922_v39  ;;  %1821 = vmatmul.mubr.bf16.gmra.mxu1 %v1932_v41  ;;  %v2479_v39 = vld [vmem:[#allocation8 + $0x28] sm:$0xff]  }
  0x64   :  { %886 = vmatpush1.bf16.msra.mxu1 %v1924_v40  ;;  %507 = vmatprep.mubr.bf16.mxu0 %v1927_v42 }
  0x65   :  { %887 = vmatprep.subr.bf16.mxu1 %v2246_v30  ;;  %1824 = vmatprep.mubr.bf16.mxu1 %v1937_v43 }
  0x66   :  { %1723 = vmatpush3.bf16.msra.mxu0 %v1983_v20 }
  0x67   :  { %1724 = vmatprep.subr.bf16.mxu0 %v1984_v21 }
  0x68   :  { %888 = vmatpush1.bf16.msra.mxu1 %v1926_v44  ;;  %v2487_v44 = vld [vmem:[#allocation8 + $0x20] sm:$0xff]  }
  0x69   :  { %889 = vmatprep.subr.bf16.mxu1 %v2246_v30 }
  0x6a   :  { %1725 = vmatpush3.bf16.msra.mxu0 %v1985_v22 }
  0x6b   :  { %508 = vmatmul.mubr.bf16.gmra.mxu0 %v1929_v45  ;;  %1825 = vmatmul.mubr.bf16.gmra.mxu1 %v1939_v46 }
  0x6c   :  { %890 = vmatpush1.bf16.msra.mxu1 %v1931_v47  ;;  %515 = vmatprep.mubr.bf16.mxu0 %v1934_v48 }
  0x6d   :  { %891 = vmatprep.subr.bf16.mxu1 %v2246_v30  ;;  %1601 = vmatprep.mubr.msk.bf16.mxu1 %vm852_vm0, %v1950_v49 }
  0x6e   :  { %1726 = vmatprep.subr.bf16.mxu0 %v1986_v23 }
  0x6f   :  { %1727 = vmatpush3.bf16.msra.mxu0 %v1987_v24 }
  0x70   :  { %892 = vmatpush1.bf16.msra.mxu1 %v1933_v50  ;;  %1728 = vmatprep.subr.bf16.mxu0 %v1988_v25 }
  0x71   :  { %901 = vmatprep.subr.bf16.mxu1 %v2246_v30 }
  0x73   :  { %516 = vmatmul.mubr.bf16.gmra.mxu0 %v1936_v51 }
  0x74   :  { %902 = vmatpush2.bf16.msra.mxu1 %v1938_v52  ;;  %523 = vmatprep.mubr.bf16.mxu0 %v1941_v53 }
  0x75   :  { %903 = vmatprep.subr.bf16.mxu1 %v2246_v30  ;;  %1729 = vmatpush3.bf16.msra.mxu0 %v1989_v26 }
  0x76   :  { %1730 = vmatprep.subr.bf16.mxu0 %v1990_v27 }
  0x78   :  { %904 = vmatpush2.bf16.msra.mxu1 %v1940_v54 }
  0x79   :  { %905 = vmatprep.subr.bf16.mxu1 %v2246_v30  ;;  %1731 = vmatpush3.bf16.msra.mxu0 %v1991_v28 }
  0x7a   :  { %1828 = vmatprep.subr.bf16.mxu0 %v2469_v31 }
  0x7b   :  { %524 = vmatmul.mubr.bf16.gmra.mxu0 %v1943_v55 }
  0x7c   :  { %906 = vmatpush2.bf16.msra.mxu1 %v1944_v56  ;;  %531 = vmatprep.mubr.bf16.mxu0 %v1946_v57 }
  0x7d   :  { %907 = vmatprep.subr.bf16.mxu1 %v2246_v30 }
  0x80   :  { %908 = vmatpush2.bf16.msra.mxu1 %v1945_v58 }
  0x81   :  { %1860 = vmatprep.subr.bf16.mxu1 %v2469_v31 }
  0x83   :  { %532 = vmatmul.mubr.bf16.gmra.mxu0 %v1951_v60  ;;  %910 = vmatmul.mubr.bf16.vlgmr.msra.gmra.mxu1 %v1948_v59 }
  0x84   :  { %539 = vmatprep.mubr.bf16.mxu0 %v1952_v61  ;;  %1602 = vmatprep.mubr.msk.bf16.mxu1 %vm852_vm0, %v1954_v62 }
  0x85   :  { %1868 = vmatpush3.bf16.msra.mxu1 %v2469_v31 }
  0x86   :  { %1861 = vmatprep.subr.bf16.mxu1 %v2472_v34 }
  0x89   :  { %1869 = vmatpush3.bf16.msra.mxu1 %v2472_v34 }
  0x8a   :  { %1862 = vmatprep.subr.bf16.mxu1 %v2479_v39 }
  0x8b   :  { %540 = vmatmul.mubr.bf16.gmra.mxu0 %v1956_v63  ;;  %918 = vmatmul.mubr.bf16.gmra.mxu1 %v1957_v0 }
  0x8c   :  { %1603 = vmatprep.mubr.msk.bf16.mxu1 %vm852_vm0, %v1958_v1 }
  0x8d   :  { %1870 = vmatpush3.bf16.msra.mxu1 %v2479_v39 }
  0x8e   :  { %1863 = vmatprep.subr.bf16.mxu1 %v2487_v44 }
  0x91   :  { %1871 = vmatpush3.bf16.msra.mxu1 %v2487_v44 }
  0x93   :  { %926 = vmatmul.mubr.bf16.gmra.mxu1 %v1960_v2 }
  0x94   :  { %1604 = vmatprep.mubr.msk.bf16.mxu1 %vm852_vm0, %v1961_v3 }
  0x9b   :  { %934 = vmatmul.mubr.bf16.gmra.mxu1 %v1963_v4 }
  0x9c   :  { %1605 = vmatprep.mubr.msk.bf16.mxu1 %vm852_vm0, %v1964_v5 }
  0xa3   :  { %942 = vmatmul.mubr.bf16.gmra.mxu1 %v1966_v6 }
  0xa4   :  { %1606 = vmatprep.mubr.msk.bf16.mxu1 %vm852_vm0, %v1967_v7 }
  0xab   :  { %950 = vmatmul.mubr.bf16.gmra.mxu1 %v1969_v10 }
  0xac   :  { %1607 = vmatprep.mubr.msk.bf16.mxu1 %vm852_vm0, %v1970_v11 }
  0xb3   :  { %958 = vmatmul.mubr.bf16.gmra.mxu1 %v1972_v15 }
  0xb4   :  { %1608 = vmatprep.mubr.msk.bf16.mxu1 %vm852_vm0, %v1973_v16 }
  0xbb   :  { %966 = vmatmul.mubr.bf16.gmra.mxu1 %v1975_v18 }
 0x113   :  { %v1652_v29 = vpop.f32.mrf.mxu0  ;;  %v2467_v30 = vpop.f32.mrf.mxu1 }
 0x115   :  { %v1653_v32 = vpop.f32.mrf.mxu0  ;;  %v582_v33 = vpop.f32.mrf.mxu1 }
 0x116   :  { %v1654_v7 = vadd.f32 %v1653_v32, %v1652_v29 }
 0x117   :  { %v1655_v35 = vpop.f32.mrf.mxu0  ;;  %v2476_v36 = vpop.f32.mrf.mxu1 }
 0x118   :  { %v486_v14 = vadd.f32 %v1654_v7, %v2531_v8 }
 0x119   :  { %v1656_v37 = vpop.f32.mrf.mxu0  ;;  %v585_v38 = vpop.f32.mrf.mxu1 }
 0x11a   :  { %v1657_v4 = vadd.f32 %v1656_v37, %v1655_v35  ;;  %v583_v22 = vadd.f32 %v582_v33, %v486_v14 }
 0x11b   :  { %v1658_v40 = vpop.f32.mrf.mxu0  ;;  %v2482_v41 = vpop.f32.mrf.mxu1 }
 0x11c   :  { %v489_v10 = vadd.f32 %v1657_v4, %v2531_v8 }
 0x11d   :  { %v1659_v42 = vpop.f32.mrf.mxu0  ;;  %v2485_v43 = vpop.f32.mrf.mxu1 }
 0x11e   :  { %v586_v17 = vadd.f32 %v585_v38, %v489_v10  ;;  %v1660_v23 = vadd.f32 %v1659_v42, %v1658_v40 }
 0x11f   :  { %v1661_v45 = vpop.f32.mrf.mxu0  ;;  %v2490_v46 = vpop.f32.mrf.mxu1 }
 0x120   :  { %2000 = vtanh.f32 %v586_v17  ;;  %v494_v35 = vadd.f32 %v1660_v23, %v2531_v8 }
 0x121   :  { %v1662_v47 = vpop.f32.mrf.mxu0  ;;  %v2493_v48 = vpop.f32.mrf.mxu1 }
 0x122   :  { %v1663_v18 = vadd.f32 %v1662_v47, %v1661_v45  ;;  %v591_v7 = vadd.f32 %v2467_v30, %v494_v35 }
 0x123   :  { %v1664_v49 = vpop.f32.mrf.mxu0  ;;  %v2496_v51 = vpop.f32.mrf.mxu1 }
 0x124   :  { %v497_v26 = vadd.f32 %v1663_v18, %v2531_v8 }
 0x125   :  { %v1665_v50 = vpop.f32.mrf.mxu0  ;;  %v2498_v54 = vpop.f32.mrf.mxu1 }
 0x126   :  { %v594_v38 = vadd.f32 %v2476_v36, %v497_v26  ;;  %v1666_v10 = vadd.f32 %v1665_v50, %v1664_v49 }
 0x127   :  { %v1667_v52 = vpop.f32.mrf.mxu0  ;;  %v2504_v57 = vpop.f32.mrf.mxu1 }
 0x129   :  { %v1668_v53 = vpop.f32.mrf.mxu0  ;;  %v2510_v60 = vpop.f32.mrf.mxu1 }
 0x12a   :  { %v1669_v32 = vadd.f32 %v1668_v53, %v1667_v52 }
 0x12b   :  { %v2500_v55 = vpop.f32.mrf.mxu0  ;;  %v1826_v63 = vpop.f32.mrf.mxu1 }
 0x12c   :  { %v505_v47 = vadd.f32 %v1669_v32, %v2531_v8 }
 0x12d   :  { %v2502_v56 = vpop.f32.mrf.mxu0  ;;  %v2518_v1 = vpop.f32.mrf.mxu1 }
 0x12e   :  { %v602_v18 = vadd.f32 %v2493_v48, %v505_v47  ;;  %v2001_v23 = vpop.eup %2000 }
 0x12f   :  { %v2506_v58 = vpop.f32.mrf.mxu0  ;;  %v2524_v5 = vpop.f32.mrf.mxu1 }
 0x131   :  { %v2508_v59 = vpop.f32.mrf.mxu0  ;;  %v2536_v11 = vpop.f32.mrf.mxu1 }
 0x132   :  { %v1675_v49 = vadd.f32 %v2508_v59, %v2506_v58 }
 0x133   :  { %v2512_v61 = vpop.f32.mrf.mxu0 }
 0x134   :  { %v513_v58 = vadd.f32 %v1675_v49, %v2531_v8 }
 0x135   :  { %v2514_v62 = vpop.f32.mrf.mxu0 }
 0x137   :  { %v2516_v0 = vpop.f32.mrf.mxu0 }
 0x139   :  { %v2520_v2 = vpop.f32.mrf.mxu0 }
 0x13b   :  { %v2522_v3 = vpop.f32.mrf.mxu0 }
 0x13d   :  { %v2526_v6 = vpop.f32.mrf.mxu0 }
 0x13f   :  { %v2533_v9 = vpop.f32.mrf.mxu0 }
 0x141   :  { %v2538_v12 = vpop.f32.mrf.mxu0 }
 0x143   :  { %v2546_v15 = vpop.f32.mrf.mxu0  ;;  %v911_v16 = vpop.f32.mrf.mxu1 }
 0x144   :  { %v912_v19 = vadd.f32 %v2543_v13, %v911_v16 }
 0x145   :  { %v2549_v20 = vpop.f32.mrf.mxu0  ;;  %v913_v21 = vpop.f32.mrf.mxu1 }
 0x146   :  { %2002 = vtanh.f32 %v912_v19  ;;  %v502_v21 = vadd.f32 %v1666_v10, %v2531_v8 }
 0x147   :  { %v2551_v24 = vpop.f32.mrf.mxu0  ;;  %v914_v25 = vpop.f32.mrf.mxu1 }
 0x148   :  { %v915_v27 = vadd.f32 %v2543_v13, %v914_v25  ;;  %v599_v32 = vadd.f32 %v2485_v43, %v502_v21 }
 0x149   :  { %v2555_v28 = vpop.f32.mrf.mxu0  ;;  %v916_v29 = vpop.f32.mrf.mxu1 }
 0x14a   :  { %2004 = vtanh.f32 %v915_v27 }
 0x14b   :  { %2006 = vtanh.f32 %v583_v22  ;;  %v1694_v37 = vpop.f32.mrf.mxu0  ;;  %v919_v33 = vpop.f32.mrf.mxu1 }
 0x14c   :  { %v920_v40 = vadd.f32 %v2543_v13, %v919_v33  ;;  %2008 = vtanh.f32 %v594_v38 }
 0x14d   :  { %v1695_v42 = vpop.f32.mrf.mxu0  ;;  %v921_v45 = vpop.f32.mrf.mxu1 }
 0x14e   :  { %v1696_v4 = vadd.f32 %v1695_v42, %v1694_v37  ;;  %2010 = vtanh.f32 %v920_v40 }
 0x14f   :  { %v1697_v14 = vpop.f32.mrf.mxu0  ;;  %v922_v52 = vpop.f32.mrf.mxu1 }
 0x150   :  { %v542_v53 = vadd.f32 %v1696_v4, %v2531_v8  ;;  %v923_v16 = vadd.f32 %v2543_v13, %v922_v52 }
 0x151   :  { %v1698_v17 = vpop.f32.mrf.mxu0  ;;  %v924_v36 = vpop.f32.mrf.mxu1 }
 0x152   :  { %2012 = vtanh.f32 %v923_v16  ;;  %v1699_v19 = vadd.f32 %v1698_v17, %v1697_v14  ;;  %v639_v22 = vadd.f32 %v1826_v63, %v542_v53  ;;  %v1672_v63 = vadd.f32 %v2502_v56, %v2500_v55 }
 0x153   :  { %2014 = vtanh.f32 %v591_v7  ;;  %v927_v30 = vpop.f32.mrf.mxu1  ;;  %v2003_v27 = vpop.eup %2002  ;;  %v610_v55 = vadd.f32 %v2490_v46, %v513_v58  ;;  %v1681_v56 = vadd.f32 %v2520_v2, %v2516_v0  ;;  %v1678_v14 = vadd.f32 %v2514_v62, %v2512_v61 }
 0x154   :  { %v545_v50 = vadd.f32 %v1699_v19, %v2531_v8  ;;  %v928_v25 = vadd.f32 %v2543_v13, %v927_v30  ;;  %2016 = vtanh.f32 %v602_v18  ;;  %v510_v43 = vadd.f32 %v1672_v63, %v2531_v8 }
 0x155   :  { %v929_v26 = vpop.f32.mrf.mxu1  ;;  %2018 = vtanh.f32 %v639_v22  ;;  %v521_v0 = vadd.f32 %v1681_v56, %v2531_v8  ;;  %v518_v61 = vadd.f32 %v1678_v14, %v2531_v8  ;;  %v1690_v58 = vadd.f32 %v2549_v20, %v2546_v15 }
 0x156   :  { %v642_v48 = vadd.f32 %v2524_v5, %v545_v50  ;;  %v607_v10 = vadd.f32 %v2482_v41, %v510_v43 }
 0x157   :  { %v2005_v29 = vpop.eup %2004  ;;  %v930_v35 = vpop.f32.mrf.mxu1  ;;  %v618_v36 = vadd.f32 %v2510_v60, %v521_v0  ;;  %v615_v50 = vadd.f32 %v2498_v54, %v518_v61  ;;  %v1684_v60 = vadd.f32 %v2526_v6, %v2522_v3  ;;  %v1693_v6 = vadd.f32 %v2555_v28, %v2551_v24 }
 0x158   :  { %v2007_v37 = vpop.eup %2006  ;;  %2020 = vtanh.f32 %v642_v48  ;;  %v931_v59 = vadd.f32 %v2543_v13, %v930_v35  ;;  %v991_v33 = vpack.c.bf16 %v2005_v29, %v2003_v27  ;;  %v534_v43 = vadd.f32 %v1690_v58, %v2531_v8 }
 0x159   :  { %2022 = vtanh.f32 %v928_v25  ;;  %v932_v38 = vpop.f32.mrf.mxu1  ;;  %v990_v40 = vpack.c.bf16 %v2001_v23, %v2007_v37  ;;  %v2009_v42 = vpop.eup %2008  ;;  %v526_v54 = vadd.f32 %v1684_v60, %v2531_v8 }
 0x15a   :  { %2024 = vtanh.f32 %v931_v59  ;;  %1173 = vmatprep.mubr.bf16.mxu0 %v991_v33  ;;  %v537_v38 = vadd.f32 %v1693_v6, %v2531_v8 }
 0x15b   :  { %2026 = vtanh.f32 %v599_v32  ;;  %v935_v5 = vpop.f32.mrf.mxu1  ;;  %1174 = vmatmul.mubr.bf16.vlgmr.msra.gmra.mxu0 %v990_v40  ;;  %v2011_v4 = vpop.eup %2010  ;;  %v623_v37 = vadd.f32 %v2496_v51, %v526_v54 }
 0x15c   :  { %1829 = vmatpush3.bf16.msra.mxu0 %v2469_v31  ;;  %v936_v45 = vadd.f32 %v2543_v13, %v935_v5  ;;  %2028 = vtanh.f32 %v610_v55  ;;  %v634_v15 = vadd.f32 %v2536_v11, %v537_v38 }
 0x15d   :  { %v937_v47 = vpop.f32.mrf.mxu1  ;;  %1830 = vmatprep.subr.bf16.mxu0 %v2472_v34 }
 0x15e   :  { %2030 = vtanh.f32 %v936_v45  ;;  %v631_v45 = vadd.f32 %v2518_v1, %v534_v43 }
 0x15f   :  { %v2013_v7 = vpop.eup %2012  ;;  %v938_v52 = vpop.f32.mrf.mxu1 }
 0x160   :  { %v2015_v46 = vpop.eup %2014  ;;  %v939_v31 = vadd.f32 %v2543_v13, %v938_v52  ;;  %v993_v2 = vpack.c.bf16 %v2013_v7, %v2011_v4  ;;  %1831 = vmatpush3.bf16.msra.mxu0 %v2472_v34  ;;  %v1687_v34 = vadd.f32 %v2538_v12, %v2533_v9 }
 0x161   :  { %v940_v53 = vpop.f32.mrf.mxu1  ;;  %v992_v16 = vpack.c.bf16 %v2009_v42, %v2015_v46  ;;  %1832 = vmatprep.subr.bf16.mxu0 %v2479_v39  ;;  %v2017_v41 = vpop.eup %2016 }
 0x162   :  { %2032 = vtanh.f32 %v939_v31  ;;  %1181 = vmatprep.mubr.bf16.mxu0 %v993_v2  ;;  %v2591_v17 = vpop.eup %2018 }
 0x163   :  { %2034 = vtanh.f32 %v607_v10  ;;  %v943_v62 = vpop.f32.mrf.mxu1  ;;  %1182 = vmatmul.mubr.bf16.gmra.mxu0 %v992_v16 }
 0x164   :  { %1833 = vmatpush3.bf16.msra.mxu0 %v2479_v39  ;;  %v944_v19 = vadd.f32 %v2543_v13, %v943_v62  ;;  %2036 = vtanh.f32 %v618_v36  ;;  %v529_v39 = vadd.f32 %v1687_v34, %v2531_v8 }
 0x165   :  { %v2597_v18 = vpop.eup %2020  ;;  %v945_v21 = vpop.f32.mrf.mxu1  ;;  %1834 = vmatprep.subr.bf16.mxu0 %v2487_v44 }
 0x166   :  { %v2023_v22 = vpop.eup %2022  ;;  %v1004_v30 = vpack.c.bf16 %v2597_v18, %v2591_v17  ;;  %2038 = vtanh.f32 %v944_v19  ;;  %v626_v3 = vadd.f32 %v2504_v57, %v529_v39  ;;  %v1998_v39 = vld [vmem:[#allocation8 + $0x8] sm:$0xff]  }
 0x167   :  { %v2025_v49 = vpop.eup %2024  ;;  %v946_v9 = vpop.f32.mrf.mxu1 }
 0x168   :  { %v2027_v12 = vpop.eup %2026  ;;  %v947_v23 = vadd.f32 %v2543_v13, %v946_v9  ;;  %v995_v25 = vpack.c.bf16 %v2025_v49, %v2023_v22  ;;  %1835 = vmatpush3.bf16.msra.mxu0 %v2487_v44 }
 0x169   :  { %v948_v26 = vpop.f32.mrf.mxu1  ;;  %v994_v27 = vpack.c.bf16 %v2017_v41, %v2027_v12  ;;  %v2029_v29 = vpop.eup %2028  ;;  %v1997_v12 = vld [vmem:[#allocation8 + $0x10] sm:$0xff]  }
 0x16a   :  { %2040 = vtanh.f32 %v947_v23  ;;  %1189 = vmatprep.mubr.bf16.mxu0 %v995_v25  ;;  %v1999_v23 = vld [vmem:[#allocation8] sm:$0xff]  }
 0x16b   :  { %2042 = vtanh.f32 %v615_v50  ;;  %v951_v48 = vpop.f32.mrf.mxu1  ;;  %1190 = vmatmul.mubr.bf16.gmra.mxu0 %v994_v27  ;;  %v2031_v44 = vpop.eup %2030 }
 0x16c   :  { %v952_v32 = vadd.f32 %v2543_v13, %v951_v48  ;;  %2044 = vtanh.f32 %v626_v3 }
 0x16d   :  { %v953_v63 = vpop.f32.mrf.mxu1 }
 0x16e   :  { %2046 = vtanh.f32 %v952_v32 }
 0x16f   :  { %v2033_v35 = vpop.eup %2032  ;;  %v954_v59 = vpop.f32.mrf.mxu1 }
 0x170   :  { %v2035_v33 = vpop.eup %2034  ;;  %v955_v57 = vadd.f32 %v2543_v13, %v954_v59  ;;  %v997_v40 = vpack.c.bf16 %v2033_v35, %v2031_v44 }
 0x171   :  { %v956_v24 = vpop.f32.mrf.mxu1  ;;  %v996_v28 = vpack.c.bf16 %v2029_v29, %v2035_v33  ;;  %v2037_v20 = vpop.eup %2036 }
 0x172   :  { %2048 = vtanh.f32 %v955_v57  ;;  %1197 = vmatprep.mubr.bf16.mxu0 %v997_v40 }
 0x173   :  { %2050 = vtanh.f32 %v623_v37  ;;  %v959_v51 = vpop.f32.mrf.mxu1  ;;  %1198 = vmatmul.mubr.bf16.gmra.mxu0 %v996_v28  ;;  %v2039_v56 = vpop.eup %2038 }
 0x174   :  { %v960_v5 = vadd.f32 %v2543_v13, %v959_v51  ;;  %2052 = vtanh.f32 %v634_v15 }
 0x175   :  { %v961_v55 = vpop.f32.mrf.mxu1 }
 0x176   :  { %2054 = vtanh.f32 %v960_v5 }
 0x177   :  { %v2041_v42 = vpop.eup %2040  ;;  %v962_v47 = vpop.f32.mrf.mxu1 }
 0x178   :  { %v2043_v4 = vpop.eup %2042  ;;  %v963_v7 = vadd.f32 %v2543_v13, %v962_v47  ;;  %v999_v10 = vpack.c.bf16 %v2041_v42, %v2039_v56 }
 0x179   :  { %v964_v8 = vpop.f32.mrf.mxu1  ;;  %v998_v14 = vpack.c.bf16 %v2037_v20, %v2043_v4  ;;  %v2045_v52 = vpop.eup %2044 }
 0x17a   :  { %2056 = vtanh.f32 %v963_v7  ;;  %1205 = vmatprep.mubr.bf16.mxu0 %v999_v10 }
 0x17b   :  { %2058 = vtanh.f32 %v631_v45  ;;  %v967_v11 = vpop.f32.mrf.mxu1  ;;  %1206 = vmatmul.mubr.bf16.gmra.mxu0 %v998_v14  ;;  %v2047_v31 = vpop.eup %2046 }
 0x17c   :  { %v968_v46 = vadd.f32 %v2543_v13, %v967_v11 }
 0x17d   :  { %v969_v0 = vpop.f32.mrf.mxu1 }
 0x17e   :  { %2060 = vtanh.f32 %v968_v46 }
 0x17f   :  { %v2049_v1 = vpop.eup %2048  ;;  %v970_v2 = vpop.f32.mrf.mxu1 }
 0x180   :  { %v2051_v53 = vpop.eup %2050  ;;  %v971_v16 = vadd.f32 %v2543_v13, %v970_v2  ;;  %v1001_v41 = vpack.c.bf16 %v2049_v1, %v2047_v31  ;;  %v1996_v13 = vld [vmem:[#allocation8 + $0x18] sm:$0xff]  }
 0x181   :  { %v972_v61 = vpop.f32.mrf.mxu1  ;;  %v1000_v62 = vpack.c.bf16 %v2045_v52, %v2051_v53  ;;  %v2053_v36 = vpop.eup %2052  ;;  %1836 = vmatprep.subr.bf16.mxu0 %v1996_v13  ;;  %1864 = vmatprep.subr.bf16.mxu1 %v1996_v13 }
 0x182   :  { %2062 = vtanh.f32 %v971_v16  ;;  %1213 = vmatprep.mubr.bf16.mxu0 %v1001_v41  ;;  %1837 = vmatpush3.bf16.msra.mxu0 %v1996_v13 }
 0x183   :  { %1214 = vmatmul.mubr.bf16.gmra.mxu0 %v1000_v62  ;;  %v2055_v34 = vpop.eup %2054  ;;  %1872 = vmatpush3.bf16.msra.mxu1 %v1996_v13 }
 0x184   :  { %1838 = vmatprep.subr.bf16.mxu0 %v1997_v12  ;;  %1865 = vmatprep.subr.bf16.mxu1 %v1997_v12 }
 0x186   :  { %1839 = vmatpush3.bf16.msra.mxu0 %v1997_v12 }
 0x187   :  { %v2057_v19 = vpop.eup %2056  ;;  %1873 = vmatpush3.bf16.msra.mxu1 %v1997_v12  ;;  %1840 = vmatprep.subr.bf16.mxu0 %v1998_v39 }
 0x188   :  { %v2059_v21 = vpop.eup %2058  ;;  %v1003_v22 = vpack.c.bf16 %v2057_v19, %v2055_v34  ;;  %1866 = vmatprep.subr.bf16.mxu1 %v1998_v39 }
 0x189   :  { %v1002_v49 = vpack.c.bf16 %v2053_v36, %v2059_v21 }
 0x18a   :  { %1221 = vmatprep.mubr.bf16.mxu0 %v1003_v22  ;;  %1841 = vmatpush3.bf16.msra.mxu0 %v1998_v39 }
 0x18b   :  { %1222 = vmatmul.mubr.bf16.gmra.mxu0 %v1002_v49  ;;  %v2061_v50 = vpop.eup %2060  ;;  %1874 = vmatpush3.bf16.msra.mxu1 %v1998_v39 }
 0x18c   :  { %1842 = vmatprep.subr.bf16.mxu0 %v1999_v23  ;;  %1867 = vmatprep.subr.bf16.mxu1 %v1999_v23 }
 0x18e   :  { %1843 = vmatpush3.bf16.msra.mxu0 %v1999_v23 }
 0x18f   :  { %v2063_v60 = vpop.eup %2062  ;;  %1875 = vmatpush3.bf16.msra.mxu1 %v1999_v23 }
 0x190   :  { %v1005_v9 = vpack.c.bf16 %v2063_v60, %v2061_v50 }
 0x192   :  { %1229 = vmatprep.mubr.bf16.mxu0 %v1005_v9 }
 0x193   :  { %1230 = vmatmul.mubr.bf16.gmra.mxu0 %v1004_v30  ;;  %v2632_v30 = vld [vmem:[%s2681_s7] ss:$0 sm:$0xff] }
 0x21b   :  { %v1732_v17 = vpop.f32.mrf.mxu0 }
 0x21d   :  { %v1733_v18 = vpop.f32.mrf.mxu0 }
 0x21e   :  { %v1734_v25 = vadd.f32 %v1733_v18, %v1732_v17 }
 0x21f   :  { %v1735_v26 = vpop.f32.mrf.mxu0 }
 0x220   :  { %v1176_v27 = vadd.f32 %v1734_v25, %v2632_v30 }
 0x221   :  { %v1736_v54 = vpop.f32.mrf.mxu0 }
 0x222   :  { %v1737_v48 = vadd.f32 %v1736_v54, %v1735_v26  ;;  %2064 = vtanh.f32 %v1176_v27 }
 0x223   :  { %v1738_v3 = vpop.f32.mrf.mxu0 }
 0x224   :  { %v1179_v6 = vadd.f32 %v1737_v48, %v2632_v30 }
 0x225   :  { %v1739_v29 = vpop.f32.mrf.mxu0 }
 0x226   :  { %2066 = vtanh.f32 %v1179_v6  ;;  %v1740_v32 = vadd.f32 %v1739_v29, %v1738_v3 }
 0x227   :  { %v1741_v63 = vpop.f32.mrf.mxu0 }
 0x228   :  { %v1184_v44 = vadd.f32 %v1740_v32, %v2632_v30 }
 0x229   :  { %v1742_v35 = vpop.f32.mrf.mxu0 }
 0x22a   :  { %v1743_v37 = vadd.f32 %v1742_v35, %v1741_v63  ;;  %2068 = vtanh.f32 %v1184_v44 }
 0x22b   :  { %v1744_v58 = vpop.f32.mrf.mxu0 }
 0x22c   :  { %v1187_v59 = vadd.f32 %v1743_v37, %v2632_v30 }
 0x22d   :  { %v1745_v33 = vpop.f32.mrf.mxu0 }
 0x22e   :  { %2070 = vtanh.f32 %v1187_v59  ;;  %v1746_v38 = vadd.f32 %v1745_v33, %v1744_v58 }
 0x22f   :  { %v1747_v57 = vpop.f32.mrf.mxu0  ;;  %v2065_v28 = vpop.eup %2064 }
 0x230   :  { %v1192_v40 = vadd.f32 %v1746_v38, %v2632_v30 }
 0x231   :  { %v1748_v24 = vpop.f32.mrf.mxu0 }
 0x232   :  { %v1749_v43 = vadd.f32 %v1748_v24, %v1747_v57  ;;  %2072 = vtanh.f32 %v1192_v40 }
 0x233   :  { %v2067_v51 = vpop.eup %2066  ;;  %v1750_v15 = vpop.f32.mrf.mxu0 }
 0x234   :  { %v1195_v20 = vadd.f32 %v1749_v43, %v2632_v30  ;;  %v1254_v5 = vpack.c.bf16 %v2067_v51, %v2065_v28 }
 0x235   :  { %v1751_v55 = vpop.f32.mrf.mxu0 }
 0x236   :  { %2074 = vtanh.f32 %v1195_v20  ;;  %v1752_v56 = vadd.f32 %v1751_v55, %v1750_v15  ;;  %1844 = vmatprep.mubr.bf16.mxu0 %v1254_v5  ;;  %v2653_v20 = vld [vmem:[%s2683_s9] ss:$0 sm:$0xff]  ;;  %s2247_s9 = smov [#allocation10]  }
 0x237   :  { %v1753_v42 = vpop.f32.mrf.mxu0  ;;  %v2069_v4 = vpop.eup %2068  ;;  %s1512_s22 = sshll.u32 %s2247_s9, 4  ;;  %s1513_s22 = int_to_ptr.vmem [resolvable:$true] %s1512_s22 }
 0x238   :  { %v1200_v45 = vadd.f32 %v1752_v56, %v2632_v30  ;;  %s2212_s23 = scalar_lea.vmem %s1513_s22, 16  ;;  %s2216_s24 = scalar_lea.vmem %s1513_s22, 32 }
 0x239   :  { %v1754_v47 = vpop.f32.mrf.mxu0  ;;  %p2213_p6 = scmp.ne.s32.totalorder %s1513_s22, %s2212_s23  ;;  %p2217_p7 = scmp.lt.s32.totalorder %s1513_s22, %s1513_s22 }
 0x23a   :  { %v1755_v7 = vadd.f32 %v1754_v47, %v1753_v42  ;;  %2076 = vtanh.f32 %v1200_v45  ;;  %p2218_p8 = scmp.lt.s32.totalorder %s2216_s24, %s2212_s23 }
 0x23b   :  { %v2071_v10 = vpop.eup %2070  ;;  %v1756_v8 = vpop.f32.mrf.mxu0 }
 0x23c   :  { %v1203_v14 = vadd.f32 %v1755_v7, %v2632_v30  ;;  %v1255_v11 = vpack.c.bf16 %v2071_v10, %v2069_v4  ;;  %p2219_p9 = por %p2218_p8, %p2217_p7 }
 0x23d   :  { %v1757_v52 = vpop.f32.mrf.mxu0 }
 0x23e   :  { %2078 = vtanh.f32 %v1203_v14  ;;  %v1758_v46 = vadd.f32 %v1757_v52, %v1756_v8  ;;  %1845 = vmatmul.mubr.bf16.vlgmr.msra.gmra.mxu0 %v1255_v11  ;;  %p2220_p10 = pnand %p2219_p9, %p2213_p6 }
 0x23f   :  { %v1759_v0 = vpop.f32.mrf.mxu0  ;;  %v2073_v2 = vpop.eup %2072 }
 0x240   :  { %v1208_v31 = vadd.f32 %v1758_v46, %v2632_v30 }
 0x241   :  { %v1760_v1 = vpop.f32.mrf.mxu0 }
 0x242   :  { %v1761_v53 = vadd.f32 %v1760_v1, %v1759_v0  ;;  %2080 = vtanh.f32 %v1208_v31 }
 0x243   :  { %v2075_v16 = vpop.eup %2074  ;;  %v1762_v41 = vpop.f32.mrf.mxu0 }
 0x244   :  { %v1211_v61 = vadd.f32 %v1761_v53, %v2632_v30  ;;  %v1256_v62 = vpack.c.bf16 %v2075_v16, %v2073_v2 }
 0x245   :  { %v1763_v36 = vpop.f32.mrf.mxu0 }
 0x246   :  { %2082 = vtanh.f32 %v1211_v61  ;;  %v1764_v34 = vadd.f32 %v1763_v36, %v1762_v41  ;;  %1848 = vmatprep.mubr.bf16.mxu1 %v1256_v62 }
 0x247   :  { %v1765_v19 = vpop.f32.mrf.mxu0  ;;  %v2077_v49 = vpop.eup %2076 }
 0x248   :  { %v1216_v21 = vadd.f32 %v1764_v34, %v2632_v30 }
 0x249   :  { %v1766_v22 = vpop.f32.mrf.mxu0 }
 0x24a   :  { %v1767_v50 = vadd.f32 %v1766_v22, %v1765_v19  ;;  %2084 = vtanh.f32 %v1216_v21 }
 0x24b   :  { %v2079_v60 = vpop.eup %2078  ;;  %v1768_v9 = vpop.f32.mrf.mxu0 }
 0x24c   :  { %v1219_v13 = vadd.f32 %v1767_v50, %v2632_v30  ;;  %v1257_v12 = vpack.c.bf16 %v2079_v60, %v2077_v49 }
 0x24d   :  { %v1769_v39 = vpop.f32.mrf.mxu0 }
 0x24e   :  { %2086 = vtanh.f32 %v1219_v13  ;;  %v1770_v23 = vadd.f32 %v1769_v39, %v1768_v9  ;;  %1849 = vmatmul.mubr.bf16.vlgmr.msra.gmra.mxu1 %v1257_v12 }
 0x24f   :  { %v1771_v17 = vpop.f32.mrf.mxu0  ;;  %v2081_v26 = vpop.eup %2080 }
 0x250   :  { %v1224_v18 = vadd.f32 %v1770_v23, %v2632_v30 }
 0x251   :  { %v1772_v25 = vpop.f32.mrf.mxu0 }
 0x252   :  { %v1773_v27 = vadd.f32 %v1772_v25, %v1771_v17  ;;  %2088 = vtanh.f32 %v1224_v18 }
 0x253   :  { %v2083_v54 = vpop.eup %2082  ;;  %v1774_v48 = vpop.f32.mrf.mxu0 }
 0x254   :  { %v1227_v3 = vadd.f32 %v1773_v27, %v2632_v30  ;;  %v1258_v6 = vpack.c.bf16 %v2083_v54, %v2081_v26 }
 0x255   :  { %v1775_v29 = vpop.f32.mrf.mxu0 }
 0x256   :  { %2090 = vtanh.f32 %v1227_v3  ;;  %v1776_v32 = vadd.f32 %v1775_v29, %v1774_v48  ;;  %1852 = vmatprep.mubr.bf16.mxu1 %v1258_v6 }
 0x257   :  { %v1777_v63 = vpop.f32.mrf.mxu0  ;;  %v2085_v37 = vpop.eup %2084 }
 0x258   :  { %v1232_v44 = vadd.f32 %v1776_v32, %v2632_v30 }
 0x259   :  { %v1778_v35 = vpop.f32.mrf.mxu0 }
 0x25a   :  { %v1779_v58 = vadd.f32 %v1778_v35, %v1777_v63  ;;  %2092 = vtanh.f32 %v1232_v44 }
 0x25b   :  { %v2087_v59 = vpop.eup %2086 }
 0x25c   :  { %v1235_v33 = vadd.f32 %v1779_v58, %v2632_v30  ;;  %v1259_v38 = vpack.c.bf16 %v2087_v59, %v2085_v37 }
 0x25e   :  { %2094 = vtanh.f32 %v1235_v33  ;;  %1853 = vmatmul.mubr.bf16.gmra.mxu1 %v1259_v38 }
 0x25f   :  { %v2089_v57 = vpop.eup %2088 }
 0x263   :  { %v2091_v40 = vpop.eup %2090 }
 0x264   :  { %v1260_v24 = vpack.c.bf16 %v2091_v40, %v2089_v57 }
 0x266   :  { %1856 = vmatprep.mubr.bf16.mxu1 %v1260_v24 }
 0x267   :  { %v2093_v28 = vpop.eup %2092 }
 0x26b   :  { %v2095_v43 = vpop.eup %2094 }
 0x26c   :  { %v1261_v51 = vpack.c.bf16 %v2095_v43, %v2093_v28 }
 0x26e   :  { %1857 = vmatmul.mubr.bf16.gmra.mxu1 %v1261_v51 }
 0x2fe   :  { %v1846_v15 = vpop.f32.mrf.mxu0 }
 0x2ff   :  { %v1376_v45 = vadd.f32 %v1846_v15, %v2653_v20 }
 0x300   :  { %v1367_v5 = vpop.f32.mrf.mxu0 }
 0x301   :  { %v1368_v30 = vadd.f32 %v2653_v20, %v1367_v5 }
 0x302   :  { %v1847_v55 = vpop.f32.mrf.mxu0 }
 0x303   :  { %2096 = vtanh.f32 %v1368_v30  ;;  %v1379_v47 = vadd.f32 %v1847_v55, %v2653_v20 }
 0x304   :  { %v1370_v56 = vpop.f32.mrf.mxu0 }
 0x305   :  { %v1371_v42 = vadd.f32 %v2653_v20, %v1370_v56 }
 0x307   :  { %2098 = vtanh.f32 %v1371_v42 }
 0x308   :  { %2100 = vtanh.f32 %v1376_v45 }
 0x309   :  { %2102 = vtanh.f32 %v1379_v47 }
 0x30e   :  { %v1850_v4 = vpop.f32.mrf.mxu1 }
 0x30f   :  { %v1392_v0 = vadd.f32 %v1850_v4, %v2653_v20 }
 0x310   :  { %v2097_v7 = vpop.eup %2096  ;;  %v1383_v10 = vpop.f32.mrf.mxu1 }
 0x311   :  { %v1384_v8 = vadd.f32 %v2653_v20, %v1383_v10  ;;  %1446 = vxpose.xlu0.b32.start [1/16] %v2097_v7, 128 }
 0x312   :  { %v1851_v14 = vpop.f32.mrf.mxu1 }
 0x313   :  { %2104 = vtanh.f32 %v1384_v8  ;;  %v1395_v1 = vadd.f32 %v1851_v14, %v2653_v20 }
 0x314   :  { %v2099_v11 = vpop.eup %2098  ;;  %v1386_v52 = vpop.f32.mrf.mxu1 }
 0x315   :  { %v1387_v46 = vadd.f32 %v2653_v20, %v1386_v52  ;;  %1447 = vxpose.xlu0.b32.cont [2/16] %v2099_v11, 128  ;;  %v2101_v31 = vpop.eup %2100 }
 0x316   :  { %v2103_v2 = vpop.eup %2102 }
 0x317   :  { %2106 = vtanh.f32 %v1387_v46 }
 0x318   :  { %2108 = vtanh.f32 %v1392_v0 }
 0x319   :  { %1448 = vxpose.xlu0.b32.cont [3/16] %v2101_v31, 128  ;;  %2110 = vtanh.f32 %v1395_v1 }
 0x31d   :  { %1449 = vxpose.xlu0.b32.cont [4/16] %v2103_v2, 128 }
 0x31e   :  { %v1854_v53 = vpop.f32.mrf.mxu1 }
 0x31f   :  { %v1408_v21 = vadd.f32 %v1854_v53, %v2653_v20 }
 0x320   :  { %v2105_v16 = vpop.eup %2104  ;;  %v1399_v41 = vpop.f32.mrf.mxu1 }
 0x321   :  { %v1400_v61 = vadd.f32 %v2653_v20, %v1399_v41  ;;  %1450 = vxpose.xlu0.b32.cont [5/16] %v2105_v16, 128 }
 0x322   :  { %v1855_v62 = vpop.f32.mrf.mxu1 }
 0x323   :  { %2112 = vtanh.f32 %v1400_v61  ;;  %v1411_v49 = vadd.f32 %v1855_v62, %v2653_v20 }
 0x324   :  { %v2107_v36 = vpop.eup %2106  ;;  %v1402_v34 = vpop.f32.mrf.mxu1 }
 0x325   :  { %v1403_v19 = vadd.f32 %v2653_v20, %v1402_v34  ;;  %1451 = vxpose.xlu0.b32.cont [6/16] %v2107_v36, 128  ;;  %v2109_v22 = vpop.eup %2108 }
 0x326   :  { %v2111_v50 = vpop.eup %2110 }
 0x327   :  { %2114 = vtanh.f32 %v1403_v19 }
 0x328   :  { %2116 = vtanh.f32 %v1408_v21 }
 0x329   :  { %1452 = vxpose.xlu0.b32.cont [7/16] %v2109_v22, 128  ;;  %2118 = vtanh.f32 %v1411_v49 }
 0x32d   :  { %1453 = vxpose.xlu0.b32.cont [8/16] %v2111_v50, 128 }
 0x32e   :  { %v1858_v60 = vpop.f32.mrf.mxu1 }
 0x32f   :  { %v1424_v25 = vadd.f32 %v1858_v60, %v2653_v20 }
 0x330   :  { %v2113_v9 = vpop.eup %2112  ;;  %v1415_v13 = vpop.f32.mrf.mxu1 }
 0x331   :  { %v1416_v12 = vadd.f32 %v2653_v20, %v1415_v13  ;;  %1454 = vxpose.xlu0.b32.cont [9/16] %v2113_v9, 128 }
 0x332   :  { %v1859_v39 = vpop.f32.mrf.mxu1 }
 0x333   :  { %2120 = vtanh.f32 %v1416_v12  ;;  %v1427_v27 = vadd.f32 %v1859_v39, %v2653_v20 }
 0x334   :  { %v2115_v23 = vpop.eup %2114  ;;  %v1418_v17 = vpop.f32.mrf.mxu1 }
 0x335   :  { %v1419_v18 = vadd.f32 %v2653_v20, %v1418_v17  ;;  %1455 = vxpose.xlu0.b32.cont [10/16] %v2115_v23, 128  ;;  %v2117_v26 = vpop.eup %2116 }
 0x336   :  { %v2119_v54 = vpop.eup %2118 }
 0x337   :  { %2122 = vtanh.f32 %v1419_v18 }
 0x338   :  { %2124 = vtanh.f32 %v1424_v25 }
 0x339   :  { %1456 = vxpose.xlu0.b32.cont [11/16] %v2117_v26, 128  ;;  %2126 = vtanh.f32 %v1427_v27 }
 0x33d   :  { %1457 = vxpose.xlu0.b32.cont [12/16] %v2119_v54, 128 }
 0x340   :  { %v2121_v48 = vpop.eup %2120 }
 0x341   :  { %1458 = vxpose.xlu0.b32.cont [13/16] %v2121_v48, 128 }
 0x344   :  { %v2123_v3 = vpop.eup %2122 }
 0x345   :  { %1459 = vxpose.xlu0.b32.cont [14/16] %v2123_v3, 128  ;;  %v2125_v6 = vpop.eup %2124 }
 0x346   :  { %v2127_v29 = vpop.eup %2126 }
 0x349   :  { %1460 = vxpose.xlu0.b32.cont [15/16] %v2125_v6, 128 }
 0x34d   :  { %1461 = vxpose.xlu0.b32.end [16/16] %v2127_v29, 128 }
 0x38d   :  { %v1462_v32 = vpop.trf.xlu0 }
 0x391   :  { %v1463_v63 = vpop.trf.xlu0 }
 0x395   :  { %v1464_v44 = vpop.trf.xlu0 }
 0x399   :  { %v1465_v35 = vpop.trf.xlu0 }
 0x39d   :  { %v1466_v37 = vpop.trf.xlu0 }
 0x3a1   :  { %v1467_v58 = vpop.trf.xlu0 }
 0x3a5   :  { %v1468_v59 = vpop.trf.xlu0 }
 0x3a9   :  { %v1469_v33 = vpop.trf.xlu0 }
 0x3ad   :  { %v1470_v38 = vpop.trf.xlu0 }
 0x3ae   :  { %v1478_v51 = vmul.f32 %v1470_v38, %v1462_v32 }
 0x3b1   :  { %v1471_v57 = vpop.trf.xlu0 }
 0x3b2   :  { %v1479_v28 = vmul.f32 %v1471_v57, %v1463_v63 }
 0x3b4   :  { %v1486_v20 = vadd.f32 %v1479_v28, %v1478_v51 }
 0x3b5   :  { %v1472_v40 = vpop.trf.xlu0 }
 0x3b6   :  { %v1480_v15 = vmul.f32 %v1472_v40, %v1464_v44 }
 0x3b8   :  { %v1487_v55 = vadd.f32 %v1486_v20, %v1480_v15 }
 0x3b9   :  { %v1473_v24 = vpop.trf.xlu0 }
 0x3ba   :  { %v1481_v5 = vmul.f32 %v1473_v24, %v1465_v35 }
 0x3bc   :  { %v1488_v42 = vadd.f32 %v1487_v55, %v1481_v5 }
 0x3bd   :  { %v1474_v43 = vpop.trf.xlu0 }
 0x3be   :  { %v1482_v56 = vmul.f32 %v1474_v43, %v1466_v37 }
 0x3c0   :  { %v1489_v4 = vadd.f32 %v1488_v42, %v1482_v56 }
 0x3c1   :  { %v1475_v30 = vpop.trf.xlu0 }
 0x3c2   :  { %v1483_v45 = vmul.f32 %v1475_v30, %v1467_v58 }
 0x3c4   :  { %v1490_v10 = vadd.f32 %v1489_v4, %v1483_v45 }
 0x3c5   :  { %v1476_v47 = vpop.trf.xlu0 }
 0x3c6   :  { %v1484_v7 = vmul.f32 %v1476_v47, %v1468_v59 }
 0x3c8   :  { %v1491_v14 = vadd.f32 %v1490_v10, %v1484_v7 }
 0x3c9   :  { %v1477_v8 = vpop.trf.xlu0 }
 0x3ca   :  { %v1485_v11 = vmul.f32 %v1477_v8, %v1469_v33 }
 0x3cc   :  { %v1492_v52 = vadd.f32 %v1491_v14, %v1485_v11 }
 0x3ce   :  { %v1493_v46 = vrot.slane %v1492_v52, 4 }
 0x3d0   :  { %v1494_v0 = vadd.f32 %v1493_v46, %v1492_v52 }
 0x3d2   :  { %v1495_v31 = vrot.slane %v1494_v0, 2 }
 0x3d4   :  { %v1496_v1 = vadd.f32 %v1495_v31, %v1494_v0 }
 0x3d6   :  { %v1497_v2 = vrot.slane %v1496_v1, 1 }
 0x3d8   :  { %v1498_v53 = vadd.f32 %v1497_v2, %v1496_v1 }
 0x3da   :  { %v1635_v16 = vmul.f32 -1.442695, %v1498_v53 }
 0x3dc   :  { %2128 = vpow2.f32 %v1635_v16 }
 0x3e9   :  { %v2129_v41 = vpop.eup %2128 }
 0x3ea   :  { %v1502_v61 = vadd.f32 1.0, %v2129_v41 }
 0x3ec   :  { %2130 = vrcp.f32 %v1502_v61 }
 0x3f9   :  { %v2131_v62 = vpop.eup %2130 }
 0x3fa   :  { %1505 = vst [vmem:[#allocation10] sm:$0x1] %v2131_v62 }
 0x3fb   :  { %2223 = shalt.err (!%p2220_p10)
}
 0x3fc   :  { %1515 = dma.vmem_to_hbm [thread:$0]  %s1513_s22, 16, %s2684_s10, [#allocation4]  }
 0x3fd   :  { %2238 = dma.done.wait [#allocation4], 16  }
 0x3fe   :  { %2239 = vsyncadd [#allocation4], 4294967280 }
 0x3ff   :  { %1519 = vsyncpa [#allocation3], 1 }
 0x400   :  { %1520 = vsyncpa [#allocation6], 1 }
 0x401   :  { %1521 = vsyncpa [#allocation9], 1 }
 0x402   :  { %1522 = vsyncpa [#allocation4], 1 }

</bundles_post_ra>
